<compile_context>
chip_gen: v6e
topology: v6e:2x2x1
jax: 0.10.0
libtpu: 0.0.40
codegen_flags: <defaults>
</compile_context>

<pallas_src>
import functools

import numpy as np
import jax
import jax.numpy as jnp
from jax.experimental import pallas as pl
from jax.experimental.pallas import tpu as pltpu

_HIDDEN = 128


def _round_up(n, m):
    return ((n + m - 1) // m) * m


def _forward_tile(xt, w1, b1, w2, b2, w3, b3, dropout_bits, p):
    """Forward math for one tile, feature-major layout.

    xt: (2, TB) f32, w1: (128, 2) f32, b1/b2: (128, 1) f32,
    w2: (128, 128) compute dtype, w3: (1, 128) compute dtype, b3: (1, 1) f32.
    dropout_bits: None or (bits1, bits2) uint32 arrays of shape (128, TB).
    Returns the (1, TB) f32 output row (lane-dense).
    """
    # ---- Layer 1: Linear(2,128) as two VPU multiply-adds (no K=2 MXU op) ----
    h = w1[:, 0:1] * xt[0:1, :] + w1[:, 1:2] * xt[1:2, :] + b1   # (128, TB) f32
    h = jnp.maximum(h, 0.0)

    if dropout_bits is not None:
        scale = np.float32(1.0 / (1.0 - p))
        thresh = np.uint32(min(int(p * (2.0 ** 32)), 2 ** 32 - 1))
        h = jnp.where(dropout_bits[0] >= thresh, h * scale, 0.0)  # P(drop) = p

    # ---- Layer 2: Linear(128,128) on the MXU, bf16 operands, f32 accumulate --
    h2 = jnp.dot(w2, h.astype(w2.dtype),
                 preferred_element_type=jnp.float32) + b2         # (128, TB)
    h2 = jnp.maximum(h2, 0.0)

    if dropout_bits is not None:
        h2 = jnp.where(dropout_bits[1] >= thresh, h2 * scale, 0.0)

    # ---- Layer 3: Linear(128,1) -> lane-dense (1, TB) row --------------------
    out = jnp.dot(w3, h2.astype(w3.dtype),
                  preferred_element_type=jnp.float32) + b3        # (1, TB)
    return out


def _eval_kernel(xt_ref, w1_ref, b1_ref, w2_ref, b2_ref, w3_ref, b3_ref,
                 o_ref, *, p):
    res = _forward_tile(xt_ref[...], w1_ref[...], b1_ref[...], w2_ref[...],
                        b2_ref[...], w3_ref[...], b3_ref[...], None, p)
    o_ref[...] = res.astype(o_ref.dtype)


def _train_bits_kernel(xt_ref, bits1_ref, bits2_ref, w1_ref, b1_ref, w2_ref,
                       b2_ref, w3_ref, b3_ref, o_ref, *, p):
    res = _forward_tile(xt_ref[...], w1_ref[...], b1_ref[...], w2_ref[...],
                        b2_ref[...], w3_ref[...], b3_ref[...],
                        (bits1_ref[...], bits2_ref[...]), p)
    o_ref[...] = res.astype(o_ref.dtype)


def _train_hw_kernel(seed_ref, xt_ref, w1_ref, b1_ref, w2_ref, b2_ref,
                     w3_ref, b3_ref, o_ref, *, p, tb):
    # Perturb the seed per grid step so batch tiles get distinct masks.
    pltpu.prng_seed(seed_ref[0] + pl.program_id(0))
    bits1 = pltpu.bitcast(pltpu.prng_random_bits((_HIDDEN, tb)), jnp.uint32)
    bits2 = pltpu.bitcast(pltpu.prng_random_bits((_HIDDEN, tb)), jnp.uint32)
    res = _forward_tile(xt_ref[...], w1_ref[...], b1_ref[...], w2_ref[...],
                        b2_ref[...], w3_ref[...], b3_ref[...],
                        (bits1, bits2), p)
    o_ref[...] = res.astype(o_ref.dtype)


def mlp_forward(x, params, *, dropout_rate, training=False, seed=0,
                block_b=1024, compute_dtype=jnp.bfloat16):
    """Forward pass of theModelClass. x: (B, 2) f32. Params in PyTorch layout."""
    w1, b1, w2, b2, w3, b3 = params          # w: (out_features, in_features)
    B = int(x.shape[0])
    p = float(dropout_rate)
    use_dropout = bool(training) and 0.0 < p < 1.0

    tb = min(_round_up(max(int(block_b), 128), 128), _round_up(max(B, 1), 128))
    b_pad = _round_up(B, tb)
    grid = (b_pad // tb,)

    # Feature-major activations: batch on lanes -> lane-dense (1, TB) output.
    xt = jnp.pad(x.astype(jnp.float32).T, ((0, 0), (0, b_pad - B)))

    w1c = w1.astype(jnp.float32)                       # layer-1 VPU path in f32
    b1c = b1.reshape(_HIDDEN, 1).astype(jnp.float32)
    w2c = w2.astype(compute_dtype)                     # MXU operands
    b2c = b2.reshape(_HIDDEN, 1).astype(jnp.float32)
    w3c = w3.reshape(1, _HIDDEN).astype(compute_dtype)
    b3c = b3.reshape(1, 1).astype(jnp.float32)
    weights = (w1c, b1c, w2c, b2c, w3c, b3c)

    # index_maps accept (grid_idx, *scalar_prefetch_refs).
    x_spec = pl.BlockSpec((2, tb), lambda i, *_: (0, i))
    bits_spec = pl.BlockSpec((_HIDDEN, tb), lambda i, *_: (0, i))
    const = lambda i, *_: (0, 0)
    w_specs = [pl.BlockSpec((_HIDDEN, 2), const),      # w1
               pl.BlockSpec((_HIDDEN, 1), const),      # b1
               pl.BlockSpec((_HIDDEN, _HIDDEN), const),  # w2
               pl.BlockSpec((_HIDDEN, 1), const),      # b2
               pl.BlockSpec((1, _HIDDEN), const),      # w3
               pl.BlockSpec((1, 1), const)]            # b3
    out_spec = pl.BlockSpec((1, tb), lambda i, *_: (0, i))
    out_shape = jax.ShapeDtypeStruct((1, b_pad), jnp.float32)
    cparams = pltpu.CompilerParams(dimension_semantics=("parallel",))

    if not use_dropout:
        kernel = functools.partial(_eval_kernel, p=p)
        gs = pltpu.PrefetchScalarGridSpec(
            num_scalar_prefetch=0, grid=grid,
            in_specs=[x_spec] + w_specs, out_specs=out_spec)
        out_t = pl.pallas_call(kernel, out_shape=out_shape, grid_spec=gs,
                               compiler_params=cparams)(xt, *weights)
    elif jax.default_backend() == "tpu":
        # On-chip hardware PRNG: no dropout-mask traffic from HBM.
        kernel = functools.partial(_train_hw_kernel, p=p, tb=tb)
        gs = pltpu.PrefetchScalarGridSpec(
            num_scalar_prefetch=1, grid=grid,
            in_specs=[x_spec] + w_specs, out_specs=out_spec)
        seed_arr = jnp.array([int(seed)], dtype=jnp.int32)
        out_t = pl.pallas_call(kernel, out_shape=out_shape, grid_spec=gs,
                               compiler_params=cparams)(seed_arr, xt, *weights)
    else:
        # Portable fallback (interpret / non-TPU backends where pltpu.prng_seed
        # does not lower): precomputed uint32 mask bits streamed as inputs.
        key = jax.random.PRNGKey(int(seed))
        bits = jax.random.bits(key, (2, _HIDDEN, b_pad), dtype=jnp.uint32)
        kernel = functools.partial(_train_bits_kernel, p=p)
        gs = pltpu.PrefetchScalarGridSpec(
            num_scalar_prefetch=0, grid=grid,
            in_specs=[x_spec, bits_spec, bits_spec] + w_specs,
            out_specs=out_spec)
        out_t = pl.pallas_call(kernel, out_shape=out_shape, grid_spec=gs,
                               compiler_params=cparams)(
                                   xt, bits[0], bits[1], *weights)

    return out_t[0, :B].reshape(B, 1)


def init_params(key):
    """PyTorch nn.Linear-style init: U(-1/sqrt(fan_in), 1/sqrt(fan_in)), (out,in) layout."""
    def linear(k, fan_in, fan_out):
        kw, kb = jax.random.split(k)
        bound = 1.0 / np.sqrt(float(fan_in))
        w = jax.random.uniform(kw, (fan_out, fan_in), jnp.float32, -bound, bound)
        b = jax.random.uniform(kb, (fan_out,), jnp.float32, -bound, bound)
        return w, b

    k1, k2, k3 = jax.random.split(key, 3)
    w1, b1 = linear(k1, 2, _HIDDEN)
    w2, b2 = linear(k2, _HIDDEN, _HIDDEN)
    w3, b3 = linear(k3, _HIDDEN, 1)
    return (w1, b1, w2, b2, w3, b3)


def reference_forward(x, params, compute_dtype=jnp.bfloat16):
    """Pure-JAX reference (eval mode), mirroring the kernel's compute dtypes."""
    w1, b1, w2, b2, w3, b3 = params
    h = jnp.maximum(x @ w1.T + b1, 0.0)
    h2 = jnp.dot(h.astype(compute_dtype), w2.astype(compute_dtype).T,
                 preferred_element_type=jnp.float32) + b2
    h2 = jnp.maximum(h2, 0.0)
    out = jnp.dot(h2.astype(compute_dtype), w3.astype(compute_dtype).T,
                  preferred_element_type=jnp.float32) + b3
    return out


if __name__ == "__main__":
    key = jax.random.PRNGKey(0)
    kp, kx = jax.random.split(key)
    params = init_params(kp)

    batch = 32
    x = jax.random.normal(kx, (batch, 2), jnp.float32)
    dropout_rate = 0.5

    # Eval mode (dropout disabled, matches PyTorch model.eval()).
    out_eval = mlp_forward(x, params, dropout_rate=dropout_rate, training=False)
    out_eval = jax.block_until_ready(out_eval)
    ref = reference_forward(x, params)
    assert out_eval.shape == (batch, 1)
    assert jnp.allclose(out_eval, ref, atol=1e-3, rtol=1e-3), \
        f"max abs err {jnp.max(jnp.abs(out_eval - ref))}"

    # Training mode exercises dropout (HW PRNG on TPU, jax.random bits elsewhere).
    # TODO(synk): dropout mask stream differs from torch's RNG; statistics match.
    out_train = mlp_forward(x, params, dropout_rate=dropout_rate,
                            training=True, seed=1234)
    out_train = jax.block_until_ready(out_train)
    assert out_train.shape == (batch, 1)
    assert bool(jnp.all(jnp.isfinite(out_train)))

    print("KERNEL_OK")
</pallas_src>

<mosaic_0001>
module attributes {stable_mosaic.version = 11 : i64} {
  func.func @_eval_kernel(%arg0: i32, %arg1: memref<2x128xf32, #tpu.memory_space<vmem>>, %arg2: memref<128x2xf32, #tpu.memory_space<vmem>>, %arg3: memref<128x1xf32, #tpu.memory_space<vmem>>, %arg4: memref<128x128xbf16, #tpu.memory_space<vmem>>, %arg5: memref<128x1xf32, #tpu.memory_space<vmem>>, %arg6: memref<1x128xbf16, #tpu.memory_space<vmem>>, %arg7: memref<1x1xf32, #tpu.memory_space<vmem>>, %arg8: memref<1x128xf32, #tpu.memory_space<vmem>>) attributes {dimension_semantics = [#tpu.dimension_semantics<parallel>], iteration_bounds = array<i64: 1>, scalar_prefetch = 0 : i64, scratch_operands = 0 : i64, tpu.core_type = #tpu.core_type<tc>, window_params = [{transform_indices = @transform_0, window_bounds = array<i64: 2, 128>}, {pipeline_mode = #tpu.pipeline_mode<synchronous>, transform_indices = @transform_1, window_bounds = array<i64: 128, 2>}, {pipeline_mode = #tpu.pipeline_mode<synchronous>, transform_indices = @transform_2, window_bounds = array<i64: 128, 1>}, {pipeline_mode = #tpu.pipeline_mode<synchronous>, transform_indices = @transform_3, window_bounds = array<i64: 128, 128>}, {pipeline_mode = #tpu.pipeline_mode<synchronous>, transform_indices = @transform_4, window_bounds = array<i64: 128, 1>}, {pipeline_mode = #tpu.pipeline_mode<synchronous>, transform_indices = @transform_5, window_bounds = array<i64: 1, 128>}, {pipeline_mode = #tpu.pipeline_mode<synchronous>, transform_indices = @transform_6, window_bounds = array<i64: 1, 1>}, {transform_indices = @transform_7, window_bounds = array<i64: 1, 128>}]} {
    %c0 = arith.constant 0 : index
    %c0_0 = arith.constant 0 : index
    %0 = vector.load %arg1[%c0, %c0_0] : memref<2x128xf32, #tpu.memory_space<vmem>>, vector<2x128xf32>
    %c0_1 = arith.constant 0 : index
    %c0_2 = arith.constant 0 : index
    %1 = vector.load %arg2[%c0_1, %c0_2] : memref<128x2xf32, #tpu.memory_space<vmem>>, vector<128x2xf32>
    %c0_3 = arith.constant 0 : index
    %c0_4 = arith.constant 0 : index
    %2 = vector.load %arg3[%c0_3, %c0_4] : memref<128x1xf32, #tpu.memory_space<vmem>>, vector<128x1xf32>
    %c0_5 = arith.constant 0 : index
    %c0_6 = arith.constant 0 : index
    %3 = vector.load %arg4[%c0_5, %c0_6] : memref<128x128xbf16, #tpu.memory_space<vmem>>, vector<128x128xbf16>
    %c0_7 = arith.constant 0 : index
    %c0_8 = arith.constant 0 : index
    %4 = vector.load %arg5[%c0_7, %c0_8] : memref<128x1xf32, #tpu.memory_space<vmem>>, vector<128x1xf32>
    %c0_9 = arith.constant 0 : index
    %c0_10 = arith.constant 0 : index
    %5 = vector.load %arg6[%c0_9, %c0_10] : memref<1x128xbf16, #tpu.memory_space<vmem>>, vector<1x128xbf16>
    %c0_11 = arith.constant 0 : index
    %c0_12 = arith.constant 0 : index
    %6 = vector.load %arg7[%c0_11, %c0_12] : memref<1x1xf32, #tpu.memory_space<vmem>>, vector<1x1xf32>
    %7 = vector.extract_strided_slice %1 {offsets = [0, 0], sizes = [128, 1], strides = [1, 1]} : vector<128x2xf32> to vector<128x1xf32>
    %8 = vector.extract_strided_slice %0 {offsets = [0, 0], sizes = [1, 128], strides = [1, 1]} : vector<2x128xf32> to vector<1x128xf32>
    %9 = vector.broadcast %7 : vector<128x1xf32> to vector<128x128xf32>
    %10 = vector.broadcast %8 : vector<1x128xf32> to vector<128x128xf32>
    %11 = arith.mulf %9, %10 : vector<128x128xf32>
    %12 = vector.extract_strided_slice %1 {offsets = [0, 1], sizes = [128, 1], strides = [1, 1]} : vector<128x2xf32> to vector<128x1xf32>
    %13 = vector.extract_strided_slice %0 {offsets = [1, 0], sizes = [1, 128], strides = [1, 1]} : vector<2x128xf32> to vector<1x128xf32>
    %14 = vector.broadcast %12 : vector<128x1xf32> to vector<128x128xf32>
    %15 = vector.broadcast %13 : vector<1x128xf32> to vector<128x128xf32>
    %16 = arith.mulf %14, %15 : vector<128x128xf32>
    %17 = arith.addf %11, %16 : vector<128x128xf32>
    %18 = vector.broadcast %2 : vector<128x1xf32> to vector<128x128xf32>
    %19 = arith.addf %17, %18 : vector<128x128xf32>
    %cst = arith.constant 0.000000e+00 : f32
    %20 = vector.broadcast %cst : f32 to vector<128x128xf32>
    %21 = arith.maximumf %19, %20 : vector<128x128xf32>
    %22 = arith.truncf %21 : vector<128x128xf32> to vector<128x128xbf16>
    %cst_13 = arith.constant dense<0.000000e+00> : vector<128x128xf32>
    %23 = tpu.matmul %3, %22, %cst_13 {dimension_numbers = #tpu.dot_dimension_numbers<[1], [0], [0], [1], [0, 0, 1, 1], [], []>} : vector<128x128xbf16>, vector<128x128xbf16>, vector<128x128xf32> -> vector<128x128xf32>
    %24 = vector.broadcast %4 : vector<128x1xf32> to vector<128x128xf32>
    %25 = arith.addf %23, %24 : vector<128x128xf32>
    %cst_14 = arith.constant 0.000000e+00 : f32
    %26 = vector.broadcast %cst_14 : f32 to vector<128x128xf32>
    %27 = arith.maximumf %25, %26 : vector<128x128xf32>
    %28 = arith.truncf %27 : vector<128x128xf32> to vector<128x128xbf16>
    %cst_15 = arith.constant dense<0.000000e+00> : vector<1x128xf32>
    %29 = tpu.matmul %5, %28, %cst_15 {dimension_numbers = #tpu.dot_dimension_numbers<[1], [0], [0], [1], [0, 0, 1, 1], [], []>} : vector<1x128xbf16>, vector<128x128xbf16>, vector<1x128xf32> -> vector<1x128xf32>
    %30 = vector.broadcast %6 : vector<1x1xf32> to vector<1x128xf32>
    %31 = arith.addf %29, %30 : vector<1x128xf32>
    %c0_16 = arith.constant 0 : index
    %c0_17 = arith.constant 0 : index
    %32 = vector.load %arg8[%c0_16, %c0_17] : memref<1x128xf32, #tpu.memory_space<vmem>>, vector<1x128xf32>
    tpu.vector_store %arg8[%c0_16, %c0_17], %31 {strides = array<i32>} : memref<1x128xf32, #tpu.memory_space<vmem>>, vector<1x128xf32>,
    return
  }
  func.func @transform_0(%arg0: i32) -> (i32, i32) {
    %c0_i32 = arith.constant 0 : i32
    %c0_i32_0 = arith.constant 0 : i32
    return %c0_i32, %arg0 : i32, i32
  }
  func.func @transform_1(%arg0: i32) -> (i32, i32) {
    %c0_i32 = arith.constant 0 : i32
    %c0_i32_0 = arith.constant 0 : i32
    %c0_i32_1 = arith.constant 0 : i32
    return %c0_i32, %c0_i32_0 : i32, i32
  }
  func.func @transform_2(%arg0: i32) -> (i32, i32) {
    %c0_i32 = arith.constant 0 : i32
    %c0_i32_0 = arith.constant 0 : i32
    %c0_i32_1 = arith.constant 0 : i32
    return %c0_i32, %c0_i32_0 : i32, i32
  }
  func.func @transform_3(%arg0: i32) -> (i32, i32) {
    %c0_i32 = arith.constant 0 : i32
    %c0_i32_0 = arith.constant 0 : i32
    %c0_i32_1 = arith.constant 0 : i32
    return %c0_i32, %c0_i32_0 : i32, i32
  }
  func.func @transform_4(%arg0: i32) -> (i32, i32) {
    %c0_i32 = arith.constant 0 : i32
    %c0_i32_0 = arith.constant 0 : i32
    %c0_i32_1 = arith.constant 0 : i32
    return %c0_i32, %c0_i32_0 : i32, i32
  }
  func.func @transform_5(%arg0: i32) -> (i32, i32) {
    %c0_i32 = arith.constant 0 : i32
    %c0_i32_0 = arith.constant 0 : i32
    %c0_i32_1 = arith.constant 0 : i32
    return %c0_i32, %c0_i32_0 : i32, i32
  }
  func.func @transform_6(%arg0: i32) -> (i32, i32) {
    %c0_i32 = arith.constant 0 : i32
    %c0_i32_0 = arith.constant 0 : i32
    %c0_i32_1 = arith.constant 0 : i32
    return %c0_i32, %c0_i32_0 : i32, i32
  }
  func.func @transform_7(%arg0: i32) -> (i32, i32) {
    %c0_i32 = arith.constant 0 : i32
    %c0_i32_0 = arith.constant 0 : i32
    return %c0_i32, %arg0 : i32, i32
  }
}

</mosaic_0001>

<bundles_post_ra>
// kernel: tpu_custom_call.1
= control target key start
LH: loop header
LB: loop body
LE: loop exit
PB: predicated region body
PF: predicated region fallthrough
CT: control target
= control target key end

     0   :  { %s1199_s0 = inlined_call_operand.vmem [shape: f32[2,128], index: 0, kind: input, shape index: {}]   ;;  %s1200_s1 = inlined_call_operand.vmem [shape: f32[128,2], index: 1, kind: input, shape index: {}]   ;;  %s1201_s2 = inlined_call_operand.vmem [shape: f32[128,1], index: 2, kind: input, shape index: {}]   ;;  %s1202_s3 = inlined_call_operand.vmem [shape: bf16[128,128], index: 3, kind: input, shape index: {}]   ;;  %s1203_s4 = inlined_call_operand.vmem [shape: f32[128,1], index: 4, kind: input, shape index: {}]   ;;  %s1204_s5 = inlined_call_operand.vmem [shape: bf16[1,128], index: 5, kind: input, shape index: {}]   ;;  %s1205_s6 = inlined_call_operand.<no memory space> [shape: f32[1,1], index: 6, kind: input, shape index: {}]   ;;  %s1206_s7 = inlined_call_operand.hbm [shape: f32[1,128], index: 7, kind: output, shape index: {}]  }
   0x1   :  { %v12_v0 = vstv %s1205_s6 }
   0x2   :  { %13 = vst [vmem:[#allocation2] sm:$0x1] %v12_v0 }
   0x3   :  { %v45_v1 = vld [vmem:[%s1200_s1 + $0x70] sm:$0xff]  ;;  %v43_v2 = vld [vmem:[%s1200_s1 + $0x60] sm:$0xff]  ;;  %v868_v3 = vmov 1   ;;  %v46_v4 = vld [vmem:[%s1200_s1 + $0x78] sm:$0xff]  ;;  %v869_v8 = vmov 0  }
   0x4   :  { %822 = vset.pattern.permute.xlu0 %v868_v3  ;;  %820 = vset.pattern.permute.xlu1 %v868_v3  ;;  %v41_v5 = vld [vmem:[%s1200_s1 + $0x50] sm:$0xff]  ;;  %v39_v6 = vld [vmem:[%s1200_s1 + $0x40] sm:$0xff]  ;;  %v44_v7 = vld [vmem:[%s1200_s1 + $0x68] sm:$0xff] }
   0x5   :  { %254 = vperm.xlu1 %820, %v45_v1   ;;  %246 = vperm.xlu0 %822, %v43_v2   ;;  %v37_v9 = vld [vmem:[%s1200_s1 + $0x30] sm:$0xff]  ;;  %v35_v10 = vld [vmem:[%s1200_s1 + $0x20] sm:$0xff] }
   0x6   :  { %v61_v11 = vld [vmem:[%s1201_s2 + $0x70] sm:$0xff] }
   0x7   :  { %v950_v12 = vld [vmem:[%s1200_s1 + $0x10] sm:$0xff] }
   0x9   :  { %258 = vperm.xlu1 %820, %v46_v4   ;;  %238 = vperm.xlu0 %822, %v41_v5  }
   0xd   :  { %821 = vset.pattern.permute.xlu1 %v869_v8  ;;  %230 = vperm.xlu0 %822, %v39_v6  }
   0xe   :  { %164 = vperm.xlu1 %821, %v44_v7  }
  0x11   :  { %222 = vperm.xlu0 %822, %v37_v9  }
  0x12   :  { %823 = vset.pattern.permute.xlu1 %v868_v3 }
  0x13   :  { %250 = vperm.xlu1 %823, %v44_v7  }
  0x15   :  { %214 = vperm.xlu0 %822, %v35_v10  }
  0x17   :  { %824 = vset.pattern.permute.xlu1 %v869_v8 }
  0x18   :  { %14 = vsyncpa [#allocation4], 0  ;;  %369 = vperm.xlu1 %824, %v61_v11   ;;  %v957_v13 = vld [vmem:[%s1200_s1] sm:$0xff]  ;;  %v42_v14 = vld [vmem:[%s1200_s1 + $0x58] sm:$0xff]  ;;  %v177_v56 = vlaneseq  ;;  %vm871_vm0 = vmmov 0   ;;  %s872_s15 = smov [#allocation3]  }
  0x19   :  { %206 = vperm.xlu0 %822, %v950_v12   ;;  %v59_v15 = vld [vmem:[%s1201_s2 + $0x60] sm:$0xff]  ;;  %v62_v16 = vld [vmem:[%s1201_s2 + $0x78] sm:$0xff]  ;;  %v40_v17 = vld [vmem:[%s1200_s1 + $0x48] sm:$0xff]  ;;  %s722_s16 = sshll.u32 %s872_s15, 4  ;;  %s723_s16 = int_to_ptr.vmem [resolvable:$true] %s722_s16 }
  0x1a   :  { %v60_v18 = vld [vmem:[%s1201_s2 + $0x68] sm:$0xff]  ;;  %v58_v19 = vld [vmem:[%s1201_s2 + $0x58] sm:$0xff]  ;;  %v57_v21 = vld [vmem:[%s1201_s2 + $0x50] sm:$0xff]  ;;  %v1084_v60 = vshrl.u32 %v177_v56, 7  ;;  %s846_s17 = scalar_lea.vmem %s723_s16, 16  ;;  %s850_s18 = scalar_lea.vmem %s723_s16, 32 }
  0x1b   :  { %v56_v20 = vld [vmem:[%s1201_s2 + $0x48] sm:$0xff]  ;;  %v54_v22 = vld [vmem:[%s1201_s2 + $0x38] sm:$0xff]  ;;  %v93_v26 = vld [vmem:[%s1203_s4 + $0x70] sm:$0xff]  ;;  %p847_p0 = scmp.ne.s32.totalorder %s723_s16, %s846_s17  ;;  %p851_p1 = scmp.lt.s32.totalorder %s723_s16, %s723_s16 }
  0x1c   :  { %149 = vperm.xlu1 %824, %v41_v5   ;;  %v52_v23 = vld [vmem:[%s1201_s2 + $0x28] sm:$0xff]  ;;  %v38_v24 = vld [vmem:[%s1200_s1 + $0x38] sm:$0xff]  ;;  %v55_v27 = vld [vmem:[%s1201_s2 + $0x40] sm:$0xff]  ;;  %v263_v0 = vsub.s32 1, %v1084_v60  ;;  %p852_p2 = scmp.lt.s32.totalorder %s850_s18, %s846_s17 }
  0x1d   :  { %198 = vperm.xlu0 %822, %v957_v13   ;;  %v50_v25 = vld [vmem:[%s1201_s2 + $0x18] sm:$0xff]  ;;  %v91_v28 = vld [vmem:[%s1203_s4 + $0x60] sm:$0xff]  ;;  %v89_v29 = vld [vmem:[%s1203_s4 + $0x50] sm:$0xff] }
  0x1e   :  { %v36_v30 = vld [vmem:[%s1200_s1 + $0x28] sm:$0xff]  ;;  %v87_v31 = vld [vmem:[%s1203_s4 + $0x40] sm:$0xff]  ;;  %v85_v32 = vld [vmem:[%s1203_s4 + $0x30] sm:$0xff]  ;;  %p853_p3 = por %p852_p2, %p851_p1 }
  0x1f   :  { %v83_v33 = vld [vmem:[%s1203_s4 + $0x20] sm:$0xff]  ;;  %v53_v34 = vld [vmem:[%s1201_s2 + $0x30] sm:$0xff]  ;;  %v34_v37 = vld [vmem:[%s1200_s1 + $0x18] sm:$0xff] }
  0x20   :  { %154 = vperm.xlu1 %824, %v42_v14   ;;  %v81_v35 = vld [vmem:[%s1203_s4 + $0x10] sm:$0xff]  ;;  %v79_v36 = vld [vmem:[%s1203_s4] sm:$0xff]  ;;  %v32_v40 = vld [vmem:[%s1200_s1 + $0x8] sm:$0xff]  ;;  %p854_p4 = pnand %p853_p3, %p847_p0 }
  0x21   :  { %835 = vset.pattern.permute.xlu0 %v869_v8  ;;  %v96_v38 = vld [vmem:[#allocation2] sm:$0x1]  ;;  %v49_v43 = vld [vmem:[%s1201_s2 + $0x10] sm:$0xff]  ;;  %v48_v49 = vld [vmem:[%s1201_s2 + $0x8] sm:$0xff] }
  0x22   :  { %169 = vperm.xlu0 %835, %v45_v1   ;;  %v51_v39 = vld [vmem:[%s1201_s2 + $0x20] sm:$0xff]  ;;  %v94_v51 = vld [vmem:[%s1203_s4 + $0x78] sm:$0xff]  ;;  %v92_v55 = vld [vmem:[%s1203_s4 + $0x68] sm:$0xff]  ;;  %v179_v1 = vsub.s32 0, %v1084_v60 }
  0x23   :  { %v47_v46 = vld [vmem:[%s1201_s2] sm:$0xff]  ;;  %v90_v59 = vld [vmem:[%s1203_s4 + $0x58] sm:$0xff]  ;;  %v88_v63 = vld [vmem:[%s1203_s4 + $0x48] sm:$0xff] }
  0x24   :  { %825 = vset.pattern.permute.xlu1 %v868_v3  ;;  %v838_v53 = vld [vmem:[%s1202_s3] sm:$0xff]   ;;  %v86_v5 = vld [vmem:[%s1203_s4 + $0x38] sm:$0xff]  ;;  %v84_v11 = vld [vmem:[%s1203_s4 + $0x28] sm:$0xff] }
  0x25   :  { %242 = vperm.xlu1 %825, %v42_v14   ;;  %779 = vmatprep.mubr.bf16.mxu0 %v838_v53 }
  0x26   :  { %174 = vperm.xlu0 %835, %v46_v4  }
  0x29   :  { %826 = vset.pattern.permute.xlu1 %v869_v8 }
  0x2a   :  { %359 = vperm.xlu1 %826, %v59_v15   ;;  %159 = vperm.xlu0 %835, %v43_v2   ;;  %v30_v2 = vld [vmem:[%s1199_s0] sm:$0x3] }
  0x2b   :  { %v1103_v7 = vrot.slane %v30_v2, %v179_v1 }
  0x2e   :  { %139 = vperm.xlu1 %826, %v39_v6   ;;  %374 = vperm.xlu0 %835, %v62_v16   ;;  %v1099_v6 = vrot.slane %v30_v2, %v263_v0 }
  0x32   :  { %144 = vperm.xlu1 %826, %v40_v17   ;;  %364 = vperm.xlu0 %835, %v60_v18   ;;  %v82_v18 = vld [vmem:[%s1203_s4 + $0x18] sm:$0xff] }
  0x36   :  { %827 = vset.pattern.permute.xlu1 %v868_v3  ;;  %354 = vperm.xlu0 %835, %v58_v19  }
  0x37   :  { %234 = vperm.xlu1 %827, %v40_v17  }
  0x3a   :  { %344 = vperm.xlu0 %835, %v56_v20  }
  0x3b   :  { %828 = vset.pattern.permute.xlu1 %v869_v8 }
  0x3c   :  { %349 = vperm.xlu1 %828, %v57_v21  }
  0x3e   :  { %334 = vperm.xlu0 %835, %v54_v22  }
  0x40   :  { %129 = vperm.xlu1 %828, %v37_v9  }
  0x42   :  { %324 = vperm.xlu0 %835, %v52_v23  }
  0x44   :  { %134 = vperm.xlu1 %828, %v38_v24  }
  0x46   :  { %314 = vperm.xlu0 %835, %v50_v25  }
  0x48   :  { %829 = vset.pattern.permute.xlu1 %v868_v3 }
  0x49   :  { %226 = vperm.xlu1 %829, %v38_v24  }
  0x4a   :  { %489 = vperm.xlu0 %835, %v93_v26  }
  0x4d   :  { %830 = vset.pattern.permute.xlu1 %v869_v8 }
  0x4e   :  { %339 = vperm.xlu1 %830, %v55_v27   ;;  %479 = vperm.xlu0 %835, %v91_v28   ;;  %v80_v27 = vld [vmem:[%s1203_s4 + $0x8] sm:$0xff] }
  0x52   :  { %119 = vperm.xlu1 %830, %v35_v10   ;;  %469 = vperm.xlu0 %835, %v89_v29  }
  0x56   :  { %124 = vperm.xlu1 %830, %v36_v30   ;;  %459 = vperm.xlu0 %835, %v87_v31  }
  0x5a   :  { %831 = vset.pattern.permute.xlu1 %v868_v3  ;;  %449 = vperm.xlu0 %835, %v85_v32  }
  0x5b   :  { %218 = vperm.xlu1 %831, %v36_v30  }
  0x5e   :  { %439 = vperm.xlu0 %835, %v83_v33  }
  0x5f   :  { %832 = vset.pattern.permute.xlu1 %v869_v8 }
  0x60   :  { %329 = vperm.xlu1 %832, %v53_v34  }
  0x62   :  { %429 = vperm.xlu0 %835, %v81_v35  }
  0x64   :  { %109 = vperm.xlu1 %832, %v950_v12  }
  0x66   :  { %419 = vperm.xlu0 %835, %v79_v36  }
  0x68   :  { %114 = vperm.xlu1 %832, %v34_v37  }
  0x6a   :  { %668 = vperm.xlu0 %835, %v96_v38  }
  0x6c   :  { %833 = vset.pattern.permute.xlu1 %v868_v3 }
  0x6d   :  { %210 = vperm.xlu1 %833, %v34_v37  }
  0x71   :  { %834 = vset.pattern.permute.xlu1 %v869_v8 }
  0x72   :  { %319 = vperm.xlu1 %834, %v51_v39  }
  0x76   :  { %99 = vperm.xlu1 %834, %v957_v13  }
  0x7a   :  { %104 = vperm.xlu1 %834, %v32_v40  }
  0x7e   :  { %836 = vset.pattern.permute.xlu1 %v868_v3 }
  0x7f   :  { %202 = vperm.xlu1 %836, %v32_v40  }
  0x80   :  { %v255_v41 = vpop.permute.xlu1 %254  ;;  %v247_v42 = vpop.permute.xlu0 %246 }
  0x81   :  { %v279_v12 = vmul.f32 %v1099_v6, %v255_v41  ;;  %v277_v13 = vmul.f32 %v1099_v6, %v247_v42 }
  0x83   :  { %837 = vset.pattern.permute.xlu1 %v869_v8 }
  0x84   :  { %v259_v44 = vpop.permute.xlu1 %258  ;;  %309 = vperm.xlu1 %837, %v49_v43   ;;  %v1056_v45 = vpop.permute.xlu0 %238 }
  0x85   :  { %v280_v19 = vmul.f32 %v1099_v6, %v259_v44  ;;  %v275_v41 = vmul.f32 %v1099_v6, %v1056_v45 }
  0x88   :  { %299 = vperm.xlu1 %837, %v47_v46   ;;  %v1061_v47 = vpop.permute.xlu0 %230 }
  0x89   :  { %v165_v48 = vpop.permute.xlu1 %164  ;;  %v273_v2 = vmul.f32 %v1099_v6, %v1061_v47 }
  0x8a   :  { %v194_v28 = vmul.f32 %v1103_v7, %v165_v48 }
  0x8c   :  { %304 = vperm.xlu1 %837, %v48_v49   ;;  %v1066_v50 = vpop.permute.xlu0 %222 }
  0x8e   :  { %v251_v52 = vpop.permute.xlu1 %250 }
  0x8f   :  { %v278_v21 = vmul.f32 %v1099_v6, %v251_v52 }
  0x90   :  { %494 = vperm.xlu1 %837, %v94_v51   ;;  %v1074_v54 = vpop.permute.xlu0 %214 }
  0x91   :  { %v294_v32 = vadd.f32 %v278_v21, %v194_v28 }
  0x93   :  { %v370_v57 = vpop.permute.xlu1 %369 }
  0x94   :  { %484 = vperm.xlu1 %837, %v92_v55   ;;  %v1079_v58 = vpop.permute.xlu0 %206 }
  0x97   :  { %v150_v61 = vpop.permute.xlu1 %149 }
  0x98   :  { %474 = vperm.xlu1 %837, %v90_v59   ;;  %v1086_v62 = vpop.permute.xlu0 %198  ;;  %v191_v42 = vmul.f32 %v1103_v7, %v150_v61 }
  0x9a   :  { %v291_v52 = vadd.f32 %v275_v41, %v191_v42 }
  0x9b   :  { %v155_v3 = vpop.permute.xlu1 %154 }
  0x9c   :  { %464 = vperm.xlu1 %837, %v88_v63   ;;  %v192_v43 = vmul.f32 %v1103_v7, %v155_v3 }
  0x9d   :  { %v170_v4 = vpop.permute.xlu0 %169 }
  0x9e   :  { %v195_v8 = vmul.f32 %v1103_v7, %v170_v4 }
  0xa0   :  { %v243_v9 = vpop.permute.xlu1 %242  ;;  %454 = vperm.xlu1 %837, %v86_v5   ;;  %v295_v14 = vadd.f32 %v279_v12, %v195_v8 }
  0xa1   :  { %v175_v10 = vpop.permute.xlu0 %174  ;;  %v276_v38 = vmul.f32 %v1099_v6, %v243_v9 }
  0xa2   :  { %v196_v15 = vmul.f32 %v1103_v7, %v175_v10  ;;  %v391_v24 = vadd.f32 %v370_v57, %v295_v14 }
  0xa3   :  { %v292_v49 = vadd.f32 %v276_v38, %v192_v43 }
  0xa4   :  { %444 = vperm.xlu1 %837, %v84_v11   ;;  %v296_v23 = vadd.f32 %v280_v19, %v196_v15  ;;  %v407_v33 = vmax.f32 %v391_v24, 0.0  ;;  %v271_v19 = vmul.f32 %v1099_v6, %v1066_v50 }
  0xa5   :  { %v360_v16 = vpop.permute.xlu1 %359  ;;  %v160_v17 = vpop.permute.xlu0 %159 }
  0xa6   :  { %v193_v20 = vmul.f32 %v1103_v7, %v160_v17 }
  0xa8   :  { %v293_v22 = vadd.f32 %v277_v13, %v193_v20  ;;  %434 = vperm.xlu1 %837, %v82_v18  }
  0xa9   :  { %v140_v25 = vpop.permute.xlu1 %139  ;;  %v375_v26 = vpop.permute.xlu0 %374 }
  0xaa   :  { %v392_v29 = vadd.f32 %v375_v26, %v296_v23  ;;  %v389_v30 = vadd.f32 %v360_v16, %v293_v22  ;;  %v189_v3 = vmul.f32 %v1103_v7, %v140_v25 }
  0xac   :  { %v408_v31 = vmax.f32 %v392_v29, 0.0  ;;  %424 = vperm.xlu1 %837, %v80_v27   ;;  %v405_v39 = vmax.f32 %v389_v30, 0.0  ;;  %v289_v10 = vadd.f32 %v273_v2, %v189_v3  ;;  %v265_v2 = vmul.f32 %v1099_v6, %v1086_v62  ;;  %v839_v62 = vld [vmem:[%s1202_s3 + $0x8] sm:$0xff]  }
  0xad   :  { %v145_v34 = vpop.permute.xlu1 %144  ;;  %v365_v35 = vpop.permute.xlu0 %364 }
  0xae   :  { %v390_v36 = vadd.f32 %v365_v35, %v294_v32  ;;  %v416_v37 = vpack.c.bf16 %v408_v31, %v407_v33  ;;  %v190_v0 = vmul.f32 %v1103_v7, %v145_v34 }
  0xb0   :  { %v406_v40 = vmax.f32 %v390_v36, 0.0  ;;  %763 = vmatprep.subr.bf16.mxu0 %v416_v37 }
  0xb1   :  { %764 = vmatpush3.bf16.msra.mxu0 %v416_v37  ;;  %v355_v48 = vpop.permute.xlu0 %354  ;;  %v269_v37 = vmul.f32 %v1099_v6, %v1074_v54 }
  0xb2   :  { %v415_v44 = vpack.c.bf16 %v406_v40, %v405_v39  ;;  %v235_v46 = vpop.permute.xlu1 %234  ;;  %v388_v51 = vadd.f32 %v355_v48, %v292_v49 }
  0xb3   :  { %v274_v61 = vmul.f32 %v1099_v6, %v235_v46 }
  0xb4   :  { %765 = vmatprep.subr.bf16.mxu0 %v415_v44  ;;  %v404_v56 = vmax.f32 %v388_v51, 0.0 }
  0xb5   :  { %766 = vmatpush3.bf16.msra.mxu0 %v415_v44  ;;  %v290_v4 = vadd.f32 %v274_v61, %v190_v0  ;;  %v345_v8 = vpop.permute.xlu0 %344 }
  0xb7   :  { %v350_v53 = vpop.permute.xlu1 %349  ;;  %v386_v9 = vadd.f32 %v345_v8, %v290_v4 }
  0xb8   :  { %v387_v55 = vadd.f32 %v350_v53, %v291_v52 }
  0xb9   :  { %v402_v13 = vmax.f32 %v386_v9, 0.0  ;;  %v335_v23 = vpop.permute.xlu0 %334 }
  0xba   :  { %v403_v57 = vmax.f32 %v387_v55, 0.0 }
  0xbb   :  { %v130_v59 = vpop.permute.xlu1 %129 }
  0xbc   :  { %v414_v63 = vpack.c.bf16 %v404_v56, %v403_v57  ;;  %v187_v20 = vmul.f32 %v1103_v7, %v130_v59  ;;  %v267_v56 = vmul.f32 %v1099_v6, %v1079_v58 }
  0xbd   :  { %v325_v38 = vpop.permute.xlu0 %324 }
  0xbe   :  { %767 = vmatprep.subr.bf16.mxu0 %v414_v63  ;;  %v287_v25 = vadd.f32 %v271_v19, %v187_v20  ;;  %v844_v19 = vld [vmem:[%s1202_s3 + $0x30] sm:$0xff]   ;;  %v845_v20 = vld [vmem:[%s1202_s3 + $0x38] sm:$0xff]  }
  0xbf   :  { %v135_v45 = vpop.permute.xlu1 %134  ;;  %768 = vmatpush3.bf16.msra.mxu0 %v414_v63 }
  0xc0   :  { %v188_v47 = vmul.f32 %v1103_v7, %v135_v45 }
  0xc1   :  { %v315_v57 = vpop.permute.xlu0 %314 }
  0xc4   :  { %v227_v5 = vpop.permute.xlu1 %226 }
  0xc5   :  { %v272_v18 = vmul.f32 %v1099_v6, %v227_v5 }
  0xc7   :  { %v288_v21 = vadd.f32 %v272_v18, %v188_v47  ;;  %v842_v18 = vld [vmem:[%s1202_s3 + $0x20] sm:$0xff]   ;;  %v843_v47 = vld [vmem:[%s1202_s3 + $0x28] sm:$0xff]  }
  0xc9   :  { %v340_v11 = vpop.permute.xlu1 %339  ;;  %v384_v24 = vadd.f32 %v335_v23, %v288_v21  ;;  %v870_v21 = vmov 0.0  }
  0xca   :  { %v385_v12 = vadd.f32 %v340_v11, %v289_v10  ;;  %795 = vmatprep.subr.bf16.mxu1 %v870_v21  ;;  %811 = vmatprep.mubr.msk.bf16.mxu1 %vm871_vm0, %v870_v21 }
  0xcb   :  { %v400_v29 = vmax.f32 %v384_v24, 0.0 }
  0xcc   :  { %v401_v14 = vmax.f32 %v385_v12, 0.0 }
  0xcd   :  { %v120_v15 = vpop.permute.xlu1 %119 }
  0xce   :  { %v413_v16 = vpack.c.bf16 %v402_v13, %v401_v14  ;;  %v185_v34 = vmul.f32 %v1103_v7, %v120_v15 }
  0xd0   :  { %769 = vmatprep.subr.bf16.mxu0 %v413_v16  ;;  %v285_v40 = vadd.f32 %v269_v37, %v185_v34 }
  0xd1   :  { %v125_v17 = vpop.permute.xlu1 %124  ;;  %770 = vmatpush3.bf16.msra.mxu0 %v413_v16 }
  0xd2   :  { %v186_v50 = vmul.f32 %v1103_v7, %v125_v17 }
  0xd6   :  { %v219_v22 = vpop.permute.xlu1 %218 }
  0xd7   :  { %v270_v33 = vmul.f32 %v1099_v6, %v219_v22 }
  0xd9   :  { %v286_v35 = vadd.f32 %v270_v33, %v186_v50 }
  0xdb   :  { %v330_v26 = vpop.permute.xlu1 %329  ;;  %v382_v39 = vadd.f32 %v325_v38, %v286_v35 }
  0xdc   :  { %v383_v27 = vadd.f32 %v330_v26, %v287_v25 }
  0xdd   :  { %v398_v44 = vmax.f32 %v382_v39, 0.0 }
  0xde   :  { %v399_v28 = vmax.f32 %v383_v27, 0.0 }
  0xdf   :  { %v110_v30 = vpop.permute.xlu1 %109 }
  0xe0   :  { %v412_v31 = vpack.c.bf16 %v400_v29, %v399_v28  ;;  %v183_v53 = vmul.f32 %v1103_v7, %v110_v30  ;;  %v490_v29 = vpop.permute.xlu0 %489 }
  0xe2   :  { %771 = vmatprep.subr.bf16.mxu0 %v412_v31  ;;  %v283_v63 = vadd.f32 %v267_v56, %v183_v53 }
  0xe3   :  { %v115_v32 = vpop.permute.xlu1 %114  ;;  %772 = vmatpush3.bf16.msra.mxu0 %v412_v31 }
  0xe4   :  { %v184_v52 = vmul.f32 %v1103_v7, %v115_v32  ;;  %v480_v50 = vpop.permute.xlu0 %479 }
  0xe8   :  { %v211_v36 = vpop.permute.xlu1 %210  ;;  %v470_v38 = vpop.permute.xlu0 %469 }
  0xe9   :  { %v268_v51 = vmul.f32 %v1099_v6, %v211_v36 }
  0xeb   :  { %v284_v55 = vadd.f32 %v268_v51, %v184_v52 }
  0xed   :  { %v320_v41 = vpop.permute.xlu1 %319  ;;  %v380_v59 = vadd.f32 %v315_v57, %v284_v55 }
  0xee   :  { %v381_v42 = vadd.f32 %v320_v41, %v285_v40 }
  0xef   :  { %v396_v5 = vmax.f32 %v380_v59, 0.0 }
  0xf0   :  { %v397_v43 = vmax.f32 %v381_v42, 0.0 }
  0xf1   :  { %v100_v46 = vpop.permute.xlu1 %99 }
  0xf2   :  { %v411_v48 = vpack.c.bf16 %v398_v44, %v397_v43  ;;  %v181_v61 = vmul.f32 %v1103_v7, %v100_v46  ;;  %v460_v46 = vpop.permute.xlu0 %459 }
  0xf4   :  { %773 = vmatprep.subr.bf16.mxu0 %v411_v48  ;;  %v281_v11 = vadd.f32 %v265_v2, %v181_v61 }
  0xf5   :  { %v105_v49 = vpop.permute.xlu1 %104  ;;  %774 = vmatpush3.bf16.msra.mxu0 %v411_v48 }
  0xf6   :  { %v182_v9 = vmul.f32 %v1103_v7, %v105_v49  ;;  %v841_v7 = vld [vmem:[%s1202_s3 + $0x18] sm:$0xff]  }
  0xfa   :  { %v203_v54 = vpop.permute.xlu1 %202 }
  0xfb   :  { %v266_v3 = vmul.f32 %v1099_v6, %v203_v54  ;;  %v840_v6 = vld [vmem:[%s1202_s3 + $0x10] sm:$0xff]  }
  0xfd   :  { %v282_v12 = vadd.f32 %v266_v3, %v182_v9 }
  0xff   :  { %v310_v45 = vpop.permute.xlu1 %309 }
 0x100   :  { %v379_v0 = vadd.f32 %v310_v45, %v283_v63  ;;  %v450_v45 = vpop.permute.xlu0 %449 }
 0x102   :  { %v395_v4 = vmax.f32 %v379_v0, 0.0 }
 0x103   :  { %v300_v8 = vpop.permute.xlu1 %299 }
 0x104   :  { %v410_v10 = vpack.c.bf16 %v396_v5, %v395_v4  ;;  %v377_v58 = vadd.f32 %v300_v8, %v281_v11  ;;  %v440_v11 = vpop.permute.xlu0 %439 }
 0x106   :  { %775 = vmatprep.subr.bf16.mxu0 %v410_v10  ;;  %v393_v15 = vmax.f32 %v377_v58, 0.0 }
 0x107   :  { %v305_v13 = vpop.permute.xlu1 %304  ;;  %776 = vmatpush3.bf16.msra.mxu0 %v410_v10 }
 0x108   :  { %v378_v14 = vadd.f32 %v305_v13, %v282_v12 }
 0x10a   :  { %v394_v16 = vmax.f32 %v378_v14, 0.0 }
 0x10b   :  { %v495_v27 = vpop.permute.xlu1 %494 }
 0x10c   :  { %v409_v17 = vpack.c.bf16 %v394_v16, %v393_v15 }
 0x10e   :  { %777 = vmatprep.subr.bf16.mxu0 %v409_v17 }
 0x10f   :  { %778 = vmatpush3.bf16.msra.mxu0 %v409_v17  ;;  %v485_v32 = vpop.permute.xlu1 %484 }
 0x112   :  { %780 = vmatmul.mubr.bf16.vlgmr.msra.gmra.mxu0 %v839_v62 }
 0x113   :  { %783 = vmatprep.mubr.bf16.mxu0 %v840_v6  ;;  %v475_v36 = vpop.permute.xlu1 %474  ;;  %v430_v6 = vpop.permute.xlu0 %429 }
 0x117   :  { %v465_v42 = vpop.permute.xlu1 %464 }
 0x11a   :  { %784 = vmatmul.mubr.bf16.gmra.mxu0 %v841_v7 }
 0x11b   :  { %787 = vmatprep.mubr.bf16.mxu0 %v842_v18  ;;  %v455_v57 = vpop.permute.xlu1 %454 }
 0x11f   :  { %v445_v5 = vpop.permute.xlu1 %444 }
 0x122   :  { %788 = vmatmul.mubr.bf16.gmra.mxu0 %v843_v47 }
 0x123   :  { %791 = vmatprep.mubr.bf16.mxu0 %v844_v19  ;;  %v435_v16 = vpop.permute.xlu1 %434 }
 0x12a   :  { %792 = vmatmul.mubr.bf16.gmra.mxu0 %v845_v20 }
 0x1d2   :  { %v1175_v22 = vpop.f32.mrf.mxu0 }
 0x1d3   :  { %v588_v19 = vadd.f32 %v1175_v22, %v430_v6 }
 0x1d4   :  { %v1177_v23 = vpop.f32.mrf.mxu0 }
 0x1d6   :  { %v782_v24 = vpop.f32.mrf.mxu0 }
 0x1d7   :  { %v591_v7 = vadd.f32 %v782_v24, %v435_v16 }
 0x1d8   :  { %v1179_v25 = vpop.f32.mrf.mxu0 }
 0x1da   :  { %v785_v26 = vpop.f32.mrf.mxu0 }
 0x1db   :  { %v604_v58 = vadd.f32 %v785_v26, %v450_v45  ;;  %v425_v26 = vpop.permute.xlu1 %424 }
 0x1dc   :  { %v595_v28 = vpop.f32.mrf.mxu0 }
 0x1dd   :  { %v648_v17 = vmax.f32 %v604_v58, 0.0  ;;  %v596_v62 = vadd.f32 %v595_v28, %v440_v11  ;;  %v644_v28 = vmax.f32 %v588_v19, 0.0 }
 0x1de   :  { %v786_v30 = vpop.f32.mrf.mxu0 }
 0x1df   :  { %v607_v8 = vadd.f32 %v786_v30, %v455_v57  ;;  %v646_v20 = vmax.f32 %v596_v62, 0.0 }
 0x1e0   :  { %v598_v31 = vpop.f32.mrf.mxu0 }
 0x1e1   :  { %v649_v13 = vmax.f32 %v607_v8, 0.0  ;;  %v599_v14 = vadd.f32 %v598_v31, %v445_v5  ;;  %v420_v31 = vpop.permute.xlu0 %419 }
 0x1e2   :  { %v789_v33 = vpop.f32.mrf.mxu0 }
 0x1e3   :  { %v620_v59 = vadd.f32 %v789_v33, %v470_v38  ;;  %v661_v18 = vpack.c.bf16 %v649_v13, %v648_v17  ;;  %v647_v47 = vmax.f32 %v599_v14, 0.0 }
 0x1e4   :  { %v611_v34 = vpop.f32.mrf.mxu0 }
 0x1e5   :  { %v652_v3 = vmax.f32 %v620_v59, 0.0  ;;  %v612_v4 = vadd.f32 %v611_v34, %v460_v46  ;;  %v660_v30 = vpack.c.bf16 %v647_v47, %v646_v20  ;;  %v669_v34 = vpop.permute.xlu0 %668 }
 0x1e6   :  { %v790_v35 = vpop.f32.mrf.mxu0 }
 0x1e7   :  { %v623_v55 = vadd.f32 %v790_v35, %v475_v36  ;;  %v650_v12 = vmax.f32 %v612_v4, 0.0 }
 0x1e8   :  { %v614_v37 = vpop.f32.mrf.mxu0 }
 0x1e9   :  { %v653_v61 = vmax.f32 %v623_v55, 0.0  ;;  %v615_v0 = vadd.f32 %v614_v37, %v465_v42 }
 0x1ea   :  { %v793_v39 = vpop.f32.mrf.mxu0 }
 0x1eb   :  { %v636_v41 = vadd.f32 %v793_v39, %v490_v29  ;;  %v663_v9 = vpack.c.bf16 %v653_v61, %v652_v3  ;;  %v651_v10 = vmax.f32 %v615_v0, 0.0  ;;  %v583_v29 = vadd.f32 %v1179_v25, %v425_v26  ;;  %v95_v25 = vld [vmem:[%s1204_s5] sm:$0x1] }
 0x1ec   :  { %v627_v40 = vpop.f32.mrf.mxu0 }
 0x1ed   :  { %v656_v49 = vmax.f32 %v636_v41, 0.0  ;;  %v628_v51 = vadd.f32 %v627_v40, %v480_v50  ;;  %v662_v15 = vpack.c.bf16 %v651_v10, %v650_v12  ;;  %v643_v33 = vmax.f32 %v583_v29, 0.0 }
 0x1ee   :  { %v794_v43 = vpop.f32.mrf.mxu0 }
 0x1ef   :  { %v639_v44 = vadd.f32 %v794_v43, %v495_v27  ;;  %v654_v63 = vmax.f32 %v628_v51, 0.0  ;;  %v645_v27 = vmax.f32 %v591_v7, 0.0 }
 0x1f0   :  { %v630_v48 = vpop.f32.mrf.mxu0 }
 0x1f1   :  { %v657_v52 = vmax.f32 %v639_v44, 0.0  ;;  %v631_v53 = vadd.f32 %v630_v48, %v485_v32  ;;  %v580_v32 = vadd.f32 %v1177_v23, %v420_v31  ;;  %v659_v24 = vpack.c.bf16 %v645_v27, %v644_v28 }
 0x1f2   :  { %v674_v23 = vrot.slane %v669_v34, %v179_v1 }
 0x1f3   :  { %v655_v54 = vmax.f32 %v631_v53, 0.0  ;;  %v665_v56 = vpack.c.bf16 %v657_v52, %v656_v49  ;;  %v642_v50 = vmax.f32 %v580_v32, 0.0 }
 0x1f5   :  { %796 = vmatpush3.bf16.msra.mxu1 %v665_v56  ;;  %v664_v2 = vpack.c.bf16 %v655_v54, %v654_v63  ;;  %v658_v22 = vpack.c.bf16 %v643_v33, %v642_v50 }
 0x1f6   :  { %797 = vmatprep.subr.bf16.mxu1 %v870_v21 }
 0x1f9   :  { %798 = vmatpush3.bf16.msra.mxu1 %v664_v2 }
 0x1fa   :  { %799 = vmatprep.subr.bf16.mxu1 %v870_v21 }
 0x1fd   :  { %800 = vmatpush3.bf16.msra.mxu1 %v663_v9 }
 0x1fe   :  { %801 = vmatprep.subr.bf16.mxu1 %v870_v21 }
 0x201   :  { %802 = vmatpush3.bf16.msra.mxu1 %v662_v15 }
 0x202   :  { %803 = vmatprep.subr.bf16.mxu1 %v870_v21 }
 0x205   :  { %804 = vmatpush3.bf16.msra.mxu1 %v661_v18 }
 0x206   :  { %805 = vmatprep.subr.bf16.mxu1 %v870_v21 }
 0x209   :  { %806 = vmatpush3.bf16.msra.mxu1 %v660_v30 }
 0x20a   :  { %807 = vmatprep.subr.bf16.mxu1 %v870_v21 }
 0x20d   :  { %808 = vmatpush3.bf16.msra.mxu1 %v659_v24 }
 0x20e   :  { %809 = vmatprep.subr.bf16.mxu1 %v870_v21 }
 0x211   :  { %810 = vmatpush3.bf16.msra.mxu1 %v658_v22 }
 0x214   :  { %812 = vmatmul.mubr.bf16.vlgmr.msra.gmra.mxu1 %v95_v25 }
 0x2d4   :  { %v709_v35 = vpop.f32.mrf.mxu1 }
 0x2d5   :  { %v710_v36 = vadd.f32 %v709_v35, %v674_v23 }
 0x2d6   :  { %v813_v37 = vpop.f32.mrf.mxu1 }
 0x2d7   :  { %715 = vst [vmem:[#allocation3] sm:$0x1] %v710_v36 }
 0x2d8   :  { %v712_v38 = vpop.f32.mrf.mxu1 }
 0x2d9   :  { %857 = shalt.err (!%p854_p4)
}
 0x2da   :  { %725 = dma.vmem_to_hbm [thread:$0]  %s723_s16, 16, %s1206_s7, [#allocation4]   ;;  %v814_v60 = vpop.f32.mrf.mxu1 }
 0x2db   :  { %866 = dma.done.wait [#allocation4], 16  }
 0x2dc   :  { %867 = vsyncadd [#allocation4], 4294967280 }
 0x2dd   :  { %729 = vsyncpa [#allocation4], 1 }

</bundles_post_ra>
